<compile_context>
chip_gen: v6e
topology: v6e:2x2x1
jax: 0.10.0
libtpu: 0.0.40
codegen_flags: <defaults>
</compile_context>

<pallas_src>
import math
import functools

import jax
import jax.numpy as jnp
from jax import lax
from jax.experimental import pallas as pl
from jax.experimental.pallas import tpu as pltpu


def _atan_ratio(num, den):
    """atan(num / max(den, 1e-6)) with a single approx reciprocal.

    Range reduction: z = min(|num|, h) / max(|num|, h) in [0, 1], then a
    degree-17 odd minimax polynomial; pi/2 complement + sign restore.
    Matches torch.atan(num / clamp(den, min=1e-6)) to ~1e-7.
    """
    hc = jnp.maximum(den, 1e-6)
    a = jnp.abs(num)
    big = a > hc
    lo = jnp.minimum(a, hc)
    hi = jnp.maximum(a, hc)
    z = lo * pl.reciprocal(hi, approx=True)          # in [0, 1]
    z2 = z * z
    p = -0.0161657367 + z2 * 0.0028662257
    p = 0.0429096138 + z2 * p
    p = -0.0752896400 + z2 * p
    p = 0.1065626393 + z2 * p
    p = -0.1420889944 + z2 * p
    p = 0.1999355085 + z2 * p
    p = -0.3333314528 + z2 * p
    at = z + z * z2 * p
    at = jnp.where(big, (math.pi / 2.0) - at, at)
    return jnp.where(num < 0.0, -at, at)


def _loss_maps_kernel(conf_ref, loc_ref, lconf_ref, wneg_ref, wpos_ref,
                      labloc_ref, xs_ref, ys_ref,
                      neg_mse_ref, psums_ref, *, scale):
    f32 = jnp.float32

    # ---- confidence prediction: sigmoid(x) == 0.5*tanh(0.5x)+0.5 (1 EUP op) ----
    conf = conf_ref[0].astype(f32)                       # (rb, C)
    pred_conf = 0.5 * jnp.tanh(0.5 * conf) + 0.5

    # ---- decode predicted boxes (reference-grid planes shared over batch) ----
    xs = xs_ref[...]                                     # (rb, C) f32
    ys = ys_ref[...]
    x1 = loc_ref[0, 0].astype(f32) * scale + xs          # corners == b1 box
    y1 = loc_ref[0, 1].astype(f32) * scale + ys
    x2 = loc_ref[0, 2].astype(f32) * scale + xs
    y2 = loc_ref[0, 3].astype(f32) * scale + ys
    pw = x2 - x1
    ph = y2 - y1
    px = x1 + pw * 0.5
    py = y1 + ph * 0.5

    # ---- labels / weights ----
    label_conf = lconf_ref[0]                            # f32
    w_neg = wneg_ref[0].astype(f32)                      # bf16 0/1 -> f32
    w_pos = wpos_ref[0].astype(f32)

    mse = (label_conf - pred_conf) ** 2
    neg_mse = mse * w_neg
    pos_mse = mse * w_pos

    # ---- CIoU between decoded prediction (corners x1..y2) and label xywh ----
    lx = labloc_ref[0, 0]
    ly = labloc_ref[0, 1]
    lw = labloc_ref[0, 2]
    lh = labloc_ref[0, 3]
    b2_minx = lx - lw * 0.5
    b2_maxx = lx + lw * 0.5
    b2_miny = ly - lh * 0.5
    b2_maxy = ly + lh * 0.5

    inter_w = jnp.maximum(jnp.minimum(x2, b2_maxx) - jnp.maximum(x1, b2_minx), 0.0)
    inter_h = jnp.maximum(jnp.minimum(y2, b2_maxy) - jnp.maximum(y1, b2_miny), 0.0)
    inter = inter_w * inter_h
    union = pw * ph + lw * lh - inter
    iou = inter * pl.reciprocal(jnp.maximum(union, 1e-6), approx=True)

    cdist = (px - lx) ** 2 + (py - ly) ** 2
    enc_w = jnp.maximum(x2, b2_maxx) - jnp.minimum(x1, b2_minx)   # >= 0 (label box valid)
    enc_h = jnp.maximum(y2, b2_maxy) - jnp.minimum(y1, b2_miny)
    ediag = enc_w * enc_w + enc_h * enc_h
    ciou = iou - cdist * pl.reciprocal(jnp.maximum(ediag, 1e-6), approx=True)

    at_p = _atan_ratio(pw, ph)
    at_l = _atan_ratio(lw, lh)
    v = (4.0 / (math.pi ** 2)) * (at_p - at_l) ** 2
    alpha = v * pl.reciprocal(jnp.maximum(1.0 - iou + v, 1e-6), approx=True)
    ciou = ciou - alpha * v
    ciou_loss = (1.0 - ciou) * w_pos

    # ---- outputs: bf16 neg-MSE map + one lane-dense (1,128) partial-sum row ----
    neg_mse_ref[0] = neg_mse.astype(neg_mse_ref.dtype)

    s_pos = jnp.sum(pos_mse, keepdims=True)              # (1, 1)
    s_ciou = jnp.sum(ciou_loss, keepdims=True)
    s_neg = jnp.sum(w_neg, keepdims=True)
    s_obj = jnp.sum(w_pos, keepdims=True)
    lane = lax.broadcasted_iota(jnp.int32, (1, 128), 1)
    row = (jnp.where(lane == 0, s_pos, 0.0)
           + jnp.where(lane == 1, s_ciou, 0.0)
           + jnp.where(lane == 2, s_neg, 0.0)
           + jnp.where(lane == 3, s_obj, 0.0))
    psums_ref[...] = row.reshape(psums_ref.shape)


def _pick_layout(N):
    """Split a flat length-N spatial axis into (R rows, C lanes) plus a
    row-block size rb so kernel blocks are lane/sublane dense, legal under the
    (8,128) rule, and small enough for the v5e/v7x scoped-VMEM defaults."""
    if N % 128 != 0:
        return 1, N, 1                       # full-extent block (always legal)
    lane_cands = [m for m in range(128, min(N, 2048) + 1, 128) if N % m == 0]
    good = [m for m in lane_cands if (N // m) % 8 == 0]
    C = max(good) if good else max(lane_cands)
    R = N // C
    max_rows = max(8, 32768 // C)            # ~128 KiB per f32 plane block
    row_cands = [d for d in range(8, min(R, max_rows) + 1, 8) if R % d == 0]
    rb = max(row_cands) if row_cands else R  # rb == R is always legal
    return R, C, rb


def fbod_loss_m(conf_pred, loc_pred, label_conf_cls, label_loc_sw, *,
                num_classes, model_input_size, scale, topk_cap=2048):
    """LossFuncM.forward for the dense-label path (getTargets already applied).

    conf_pred: (bs, 1, H, W) NCHW confidence logits     == input[0]
    loc_pred : (bs, 4, H, W) NCHW raw box regression    == input[1]
    label_conf_cls: (bs, H, W, num_classes)             == targets[0]
    label_loc_sw  : (bs, H, W, >=4), xywh in ch. 0..3   == targets[1]
    """
    # TODO(synk): filter_outermin/max_scale_targets and getTargets operate on
    # ragged python lists of raw annotations; they are host-side preprocessing
    # and are not reproduced here.
    bs, _, H, W = conf_pred.shape
    N = H * W
    f32 = jnp.float32

    R, C, rb = _pick_layout(N)
    n_r = R // rb

    # Predictions: free reshapes only, native dtype (upcast per-block in-kernel).
    conf = conf_pred.reshape(bs, R, C)
    loc = loc_pred.reshape(bs, 4, R, C)

    # Labels (NHWC, copied once): label_conf stays f32; 0/1 weights go bf16.
    cls = label_conf_cls.reshape(bs, N, -1).astype(f32)
    label_conf = jnp.sum(cls[..., 1:], axis=-1).reshape(bs, R, C)
    cls_ceil = jnp.ceil(cls)
    w_neg = cls_ceil[..., 0]
    if num_classes > 2:
        w_pos = (1.0 - w_neg) * jnp.sum(cls_ceil, axis=-1)
    else:
        w_pos = cls_ceil[..., 1]
    w_neg = w_neg.astype(jnp.bfloat16).reshape(bs, R, C)
    w_pos = w_pos.astype(jnp.bfloat16).reshape(bs, R, C)
    labloc = jnp.moveaxis(
        label_loc_sw.reshape(bs, N, -1)[..., :4].astype(f32), -1, 1
    ).reshape(bs, 4, R, C)

    # Constant reference-point grids (shared across batches).
    sx = float(model_input_size[0]) / W
    sy = float(model_input_size[1]) / H
    xs_plane = jnp.broadcast_to(
        (jnp.arange(W, dtype=f32) * sx + sx / 2.0)[None, :], (H, W)).reshape(R, C)
    ys_plane = jnp.broadcast_to(
        (jnp.arange(H, dtype=f32) * sy + sy / 2.0)[:, None], (H, W)).reshape(R, C)

    in_bytes = sum(int(x.size) * x.dtype.itemsize for x in
                   (conf, loc, label_conf, w_neg, w_pos, labloc, xs_plane, ys_plane))
    out_bytes = bs * N * 2 + bs * n_r * 128 * 4
    cost = pl.CostEstimate(flops=int(110 * bs * N),
                           transcendentals=int(8 * bs * N),
                           bytes_accessed=int(in_bytes + out_bytes))

    kern = functools.partial(_loss_maps_kernel, scale=float(scale))
    # Grid: (row_chunks, batch); batch innermost so the shared xs/ys blocks
    # keep the same block index across consecutive steps.
    neg_mse, psums = pl.pallas_call(
        kern,
        grid=(n_r, bs),
        in_specs=[
            pl.BlockSpec((1, rb, C), lambda r, b: (b, r, 0)),       # conf logits
            pl.BlockSpec((1, 4, rb, C), lambda r, b: (b, 0, r, 0)),  # raw loc regression
            pl.BlockSpec((1, rb, C), lambda r, b: (b, r, 0)),       # label_conf (f32)
            pl.BlockSpec((1, rb, C), lambda r, b: (b, r, 0)),       # w_neg (bf16)
            pl.BlockSpec((1, rb, C), lambda r, b: (b, r, 0)),       # w_pos (bf16)
            pl.BlockSpec((1, 4, rb, C), lambda r, b: (b, 0, r, 0)),  # label boxes xywh
            pl.BlockSpec((rb, C), lambda r, b: (r, 0)),             # xs grid
            pl.BlockSpec((rb, C), lambda r, b: (r, 0)),             # ys grid
        ],
        out_specs=[
            pl.BlockSpec((1, rb, C), lambda r, b: (b, r, 0)),       # neg-MSE map (bf16)
            pl.BlockSpec((1, 1, 1, 128), lambda r, b: (b, r, 0, 0)),  # packed partial sums
        ],
        out_shape=(jax.ShapeDtypeStruct((bs, R, C), jnp.bfloat16),
                   jax.ShapeDtypeStruct((bs, n_r, 1, 128), f32)),
        compiler_params=pltpu.CompilerParams(
            dimension_semantics=("parallel", "parallel")),
        cost_estimate=cost,
    )(conf, loc, label_conf, w_neg, w_pos, labloc, xs_plane, ys_plane)

    sums = jnp.sum(psums, axis=(1, 2))            # (bs, 128) f32
    pos_sum = sums[:, 0]
    ciou_sum = sums[:, 1]
    neg_num = sums[:, 2]
    obj_num = sums[:, 3]
    neg_mse_flat = neg_mse.reshape(bs, N)

    # --- CONF loss, object branch: sum of top-min(2k, neg_num) negatives ---
    # Bounded top-k + cumsum instead of a full O(N log N) sort of the map.
    # TODO(synk): exact only while min(2*obj_num, neg_num) <= topk_cap (true
    # for realistic detection label densities); raise topk_cap otherwise.
    kmax = max(1, int(min(N, int(topk_cap))))
    top_vals = lax.top_k(neg_mse_flat, kmax)[0].astype(f32)       # (bs, kmax)
    csum = jnp.concatenate(
        [jnp.zeros((bs, 1), f32), jnp.cumsum(top_vals, axis=-1)], axis=-1)
    k = obj_num.astype(jnp.int32)
    topk_k = jnp.minimum(jnp.minimum(2 * k, neg_num.astype(jnp.int32)), kmax)
    topk_sum = jnp.take_along_axis(csum, topk_k[:, None], axis=-1)[:, 0]
    safe_obj = jnp.where(obj_num > 0, obj_num, 1.0)
    conf_obj = (topk_sum + 10.0 * pos_sum) / safe_obj

    # no-object branch of the reference: top-20 along the last (W) axis, / 10
    kk = min(20, W)
    row_top = lax.top_k(neg_mse_flat.reshape(bs, H, W), kk)[0].astype(f32)
    conf_noobj = jnp.sum(row_top, axis=(1, 2)) / 10.0

    has_obj = obj_num > 0
    CONF_loss = jnp.sum(jnp.where(has_obj, conf_obj, conf_noobj))
    LOC_loss = jnp.sum(jnp.where(has_obj, ciou_sum / safe_obj, 0.0))
    return (10.0 * CONF_loss + 100.0 * LOC_loss) / bs


if __name__ == "__main__":
    key = jax.random.PRNGKey(0)
    bs, num_classes = 2, 2
    H, W = 16, 32                      # feature map (in_h, in_w)
    model_input_size = (64, 32)        # (width, height); stride 2 -> (16, 32) grid
    scale = 8.0                        # scale_list[1]

    ks = jax.random.split(key, 6)
    conf_pred = jax.random.normal(ks[0], (bs, 1, H, W), jnp.float32)
    loc_pred = 0.5 * jax.random.normal(ks[1], (bs, 4, H, W), jnp.float32)

    # synthetic dense targets (the post-getTargets representation)
    pos_mask = (jax.random.uniform(ks[2], (bs, H, W)) < 0.05).astype(jnp.float32)
    label_conf_cls = jnp.stack([1.0 - pos_mask, pos_mask], axis=-1)        # (bs,H,W,2)

    gx = jax.random.uniform(ks[3], (bs, H, W)) * model_input_size[0]
    gy = jax.random.uniform(ks[4], (bs, H, W)) * model_input_size[1]
    gwh = jax.random.uniform(ks[5], (bs, H, W))
    gw = 4.0 + 4.0 * gwh
    gh = 3.0 + 3.0 * gwh
    label_loc_sw = jnp.stack(
        [gx, gy, gw, gh, jnp.ones((bs, H, W), jnp.float32)], axis=-1)      # (bs,H,W,5)

    loss = fbod_loss_m(conf_pred, loc_pred, label_conf_cls, label_loc_sw,
                       num_classes=num_classes,
                       model_input_size=model_input_size,
                       scale=scale)
    loss = jax.block_until_ready(loss)
    print("KERNEL_OK")
</pallas_src>

<mosaic_0001>
module attributes {stable_mosaic.version = 11 : i64} {
  func.func @_loss_maps_kernel(%arg0: i32, %arg1: i32, %arg2: memref<1x1x512xf32, #tpu.memory_space<vmem>>, %arg3: memref<1x4x1x512xf32, #tpu.memory_space<vmem>>, %arg4: memref<1x1x512xf32, #tpu.memory_space<vmem>>, %arg5: memref<1x1x512xbf16, #tpu.memory_space<vmem>>, %arg6: memref<1x1x512xbf16, #tpu.memory_space<vmem>>, %arg7: memref<1x4x1x512xf32, #tpu.memory_space<vmem>>, %arg8: memref<1x512xf32, #tpu.memory_space<vmem>>, %arg9: memref<1x512xf32, #tpu.memory_space<vmem>>, %arg10: memref<1x1x512xbf16, #tpu.memory_space<vmem>>, %arg11: memref<1x1x1x128xf32, #tpu.memory_space<vmem>>) attributes {dimension_semantics = [#tpu.dimension_semantics<parallel>, #tpu.dimension_semantics<parallel>], iteration_bounds = array<i64: 1, 2>, scalar_prefetch = 0 : i64, scratch_operands = 0 : i64, tpu.core_type = #tpu.core_type<tc>, window_params = [{transform_indices = @transform_0, window_bounds = array<i64: 1, 1, 512>}, {transform_indices = @transform_1, window_bounds = array<i64: 1, 4, 1, 512>}, {transform_indices = @transform_2, window_bounds = array<i64: 1, 1, 512>}, {transform_indices = @transform_3, window_bounds = array<i64: 1, 1, 512>}, {transform_indices = @transform_4, window_bounds = array<i64: 1, 1, 512>}, {transform_indices = @transform_5, window_bounds = array<i64: 1, 4, 1, 512>}, {transform_indices = @transform_6, window_bounds = array<i64: 1, 512>}, {transform_indices = @transform_7, window_bounds = array<i64: 1, 512>}, {transform_indices = @transform_8, window_bounds = array<i64: 1, 1, 512>}, {transform_indices = @transform_9, window_bounds = array<i64: 1, 1, 1, 128>}]} {
    %c0 = arith.constant 0 : index
    %c0_0 = arith.constant 0 : index
    %c0_1 = arith.constant 0 : index
    %0 = vector.load %arg2[%c0, %c0_0, %c0_1] : memref<1x1x512xf32, #tpu.memory_space<vmem>>, vector<1x1x512xf32>
    %1 = vector.shape_cast %0 : vector<1x1x512xf32> to vector<1x512xf32>
    %cst = arith.constant 5.000000e-01 : f32
    %2 = vector.broadcast %cst : f32 to vector<1x512xf32>
    %3 = arith.mulf %2, %1 : vector<1x512xf32>
    %4 = math.tanh %3 : vector<1x512xf32>
    %cst_2 = arith.constant 5.000000e-01 : f32
    %5 = vector.broadcast %cst_2 : f32 to vector<1x512xf32>
    %6 = arith.mulf %5, %4 : vector<1x512xf32>
    %cst_3 = arith.constant 5.000000e-01 : f32
    %7 = vector.broadcast %cst_3 : f32 to vector<1x512xf32>
    %8 = arith.addf %6, %7 : vector<1x512xf32>
    %c0_4 = arith.constant 0 : index
    %c0_5 = arith.constant 0 : index
    %9 = vector.load %arg8[%c0_4, %c0_5] : memref<1x512xf32, #tpu.memory_space<vmem>>, vector<1x512xf32>
    %c0_6 = arith.constant 0 : index
    %c0_7 = arith.constant 0 : index
    %10 = vector.load %arg9[%c0_6, %c0_7] : memref<1x512xf32, #tpu.memory_space<vmem>>, vector<1x512xf32>
    %c0_8 = arith.constant 0 : index
    %c0_9 = arith.constant 0 : index
    %c0_10 = arith.constant 0 : index
    %c0_11 = arith.constant 0 : index
    %11 = vector.load %arg3[%c0_8, %c0_9, %c0_10, %c0_11] : memref<1x4x1x512xf32, #tpu.memory_space<vmem>>, vector<1x1x1x512xf32>
    %12 = vector.shape_cast %11 : vector<1x1x1x512xf32> to vector<1x512xf32>
    %cst_12 = arith.constant 8.000000e+00 : f32
    %13 = vector.broadcast %cst_12 : f32 to vector<1x512xf32>
    %14 = arith.mulf %12, %13 : vector<1x512xf32>
    %15 = arith.addf %14, %9 : vector<1x512xf32>
    %c0_13 = arith.constant 0 : index
    %c1 = arith.constant 1 : index
    %c0_14 = arith.constant 0 : index
    %c0_15 = arith.constant 0 : index
    %16 = vector.load %arg3[%c0_13, %c1, %c0_14, %c0_15] : memref<1x4x1x512xf32, #tpu.memory_space<vmem>>, vector<1x1x1x512xf32>
    %17 = vector.shape_cast %16 : vector<1x1x1x512xf32> to vector<1x512xf32>
    %cst_16 = arith.constant 8.000000e+00 : f32
    %18 = vector.broadcast %cst_16 : f32 to vector<1x512xf32>
    %19 = arith.mulf %17, %18 : vector<1x512xf32>
    %20 = arith.addf %19, %10 : vector<1x512xf32>
    %c0_17 = arith.constant 0 : index
    %c2 = arith.constant 2 : index
    %c0_18 = arith.constant 0 : index
    %c0_19 = arith.constant 0 : index
    %21 = vector.load %arg3[%c0_17, %c2, %c0_18, %c0_19] : memref<1x4x1x512xf32, #tpu.memory_space<vmem>>, vector<1x1x1x512xf32>
    %22 = vector.shape_cast %21 : vector<1x1x1x512xf32> to vector<1x512xf32>
    %cst_20 = arith.constant 8.000000e+00 : f32
    %23 = vector.broadcast %cst_20 : f32 to vector<1x512xf32>
    %24 = arith.mulf %22, %23 : vector<1x512xf32>
    %25 = arith.addf %24, %9 : vector<1x512xf32>
    %c0_21 = arith.constant 0 : index
    %c3 = arith.constant 3 : index
    %c0_22 = arith.constant 0 : index
    %c0_23 = arith.constant 0 : index
    %26 = vector.load %arg3[%c0_21, %c3, %c0_22, %c0_23] : memref<1x4x1x512xf32, #tpu.memory_space<vmem>>, vector<1x1x1x512xf32>
    %27 = vector.shape_cast %26 : vector<1x1x1x512xf32> to vector<1x512xf32>
    %cst_24 = arith.constant 8.000000e+00 : f32
    %28 = vector.broadcast %cst_24 : f32 to vector<1x512xf32>
    %29 = arith.mulf %27, %28 : vector<1x512xf32>
    %30 = arith.addf %29, %10 : vector<1x512xf32>
    %31 = arith.subf %25, %15 : vector<1x512xf32>
    %32 = arith.subf %30, %20 : vector<1x512xf32>
    %cst_25 = arith.constant 5.000000e-01 : f32
    %33 = vector.broadcast %cst_25 : f32 to vector<1x512xf32>
    %34 = arith.mulf %31, %33 : vector<1x512xf32>
    %35 = arith.addf %15, %34 : vector<1x512xf32>
    %cst_26 = arith.constant 5.000000e-01 : f32
    %36 = vector.broadcast %cst_26 : f32 to vector<1x512xf32>
    %37 = arith.mulf %32, %36 : vector<1x512xf32>
    %38 = arith.addf %20, %37 : vector<1x512xf32>
    %c0_27 = arith.constant 0 : index
    %c0_28 = arith.constant 0 : index
    %c0_29 = arith.constant 0 : index
    %39 = vector.load %arg4[%c0_27, %c0_28, %c0_29] : memref<1x1x512xf32, #tpu.memory_space<vmem>>, vector<1x1x512xf32>
    %40 = vector.shape_cast %39 : vector<1x1x512xf32> to vector<1x512xf32>
    %c0_30 = arith.constant 0 : index
    %c0_31 = arith.constant 0 : index
    %c0_32 = arith.constant 0 : index
    %41 = vector.load %arg5[%c0_30, %c0_31, %c0_32] : memref<1x1x512xbf16, #tpu.memory_space<vmem>>, vector<1x1x512xbf16>
    %42 = vector.shape_cast %41 : vector<1x1x512xbf16> to vector<1x512xbf16>
    %43 = arith.extf %42 : vector<1x512xbf16> to vector<1x512xf32>
    %c0_33 = arith.constant 0 : index
    %c0_34 = arith.constant 0 : index
    %c0_35 = arith.constant 0 : index
    %44 = vector.load %arg6[%c0_33, %c0_34, %c0_35] : memref<1x1x512xbf16, #tpu.memory_space<vmem>>, vector<1x1x512xbf16>
    %45 = vector.shape_cast %44 : vector<1x1x512xbf16> to vector<1x512xbf16>
    %46 = arith.extf %45 : vector<1x512xbf16> to vector<1x512xf32>
    %47 = arith.subf %40, %8 : vector<1x512xf32>
    %48 = arith.mulf %47, %47 : vector<1x512xf32>
    %49 = arith.mulf %48, %43 : vector<1x512xf32>
    %50 = arith.mulf %48, %46 : vector<1x512xf32>
    %c0_36 = arith.constant 0 : index
    %c0_37 = arith.constant 0 : index
    %c0_38 = arith.constant 0 : index
    %c0_39 = arith.constant 0 : index
    %51 = vector.load %arg7[%c0_36, %c0_37, %c0_38, %c0_39] : memref<1x4x1x512xf32, #tpu.memory_space<vmem>>, vector<1x1x1x512xf32>
    %52 = vector.shape_cast %51 : vector<1x1x1x512xf32> to vector<1x512xf32>
    %c0_40 = arith.constant 0 : index
    %c1_41 = arith.constant 1 : index
    %c0_42 = arith.constant 0 : index
    %c0_43 = arith.constant 0 : index
    %53 = vector.load %arg7[%c0_40, %c1_41, %c0_42, %c0_43] : memref<1x4x1x512xf32, #tpu.memory_space<vmem>>, vector<1x1x1x512xf32>
    %54 = vector.shape_cast %53 : vector<1x1x1x512xf32> to vector<1x512xf32>
    %c0_44 = arith.constant 0 : index
    %c2_45 = arith.constant 2 : index
    %c0_46 = arith.constant 0 : index
    %c0_47 = arith.constant 0 : index
    %55 = vector.load %arg7[%c0_44, %c2_45, %c0_46, %c0_47] : memref<1x4x1x512xf32, #tpu.memory_space<vmem>>, vector<1x1x1x512xf32>
    %56 = vector.shape_cast %55 : vector<1x1x1x512xf32> to vector<1x512xf32>
    %c0_48 = arith.constant 0 : index
    %c3_49 = arith.constant 3 : index
    %c0_50 = arith.constant 0 : index
    %c0_51 = arith.constant 0 : index
    %57 = vector.load %arg7[%c0_48, %c3_49, %c0_50, %c0_51] : memref<1x4x1x512xf32, #tpu.memory_space<vmem>>, vector<1x1x1x512xf32>
    %58 = vector.shape_cast %57 : vector<1x1x1x512xf32> to vector<1x512xf32>
    %cst_52 = arith.constant 5.000000e-01 : f32
    %59 = vector.broadcast %cst_52 : f32 to vector<1x512xf32>
    %60 = arith.mulf %56, %59 : vector<1x512xf32>
    %61 = arith.subf %52, %60 : vector<1x512xf32>
    %cst_53 = arith.constant 5.000000e-01 : f32
    %62 = vector.broadcast %cst_53 : f32 to vector<1x512xf32>
    %63 = arith.mulf %56, %62 : vector<1x512xf32>
    %64 = arith.addf %52, %63 : vector<1x512xf32>
    %cst_54 = arith.constant 5.000000e-01 : f32
    %65 = vector.broadcast %cst_54 : f32 to vector<1x512xf32>
    %66 = arith.mulf %58, %65 : vector<1x512xf32>
    %67 = arith.subf %54, %66 : vector<1x512xf32>
    %cst_55 = arith.constant 5.000000e-01 : f32
    %68 = vector.broadcast %cst_55 : f32 to vector<1x512xf32>
    %69 = arith.mulf %58, %68 : vector<1x512xf32>
    %70 = arith.addf %54, %69 : vector<1x512xf32>
    %71 = arith.minimumf %25, %64 : vector<1x512xf32>
    %72 = arith.maximumf %15, %61 : vector<1x512xf32>
    %73 = arith.subf %71, %72 : vector<1x512xf32>
    %cst_56 = arith.constant 0.000000e+00 : f32
    %74 = vector.broadcast %cst_56 : f32 to vector<1x512xf32>
    %75 = arith.maximumf %73, %74 : vector<1x512xf32>
    %76 = arith.minimumf %30, %70 : vector<1x512xf32>
    %77 = arith.maximumf %20, %67 : vector<1x512xf32>
    %78 = arith.subf %76, %77 : vector<1x512xf32>
    %cst_57 = arith.constant 0.000000e+00 : f32
    %79 = vector.broadcast %cst_57 : f32 to vector<1x512xf32>
    %80 = arith.maximumf %78, %79 : vector<1x512xf32>
    %81 = arith.mulf %75, %80 : vector<1x512xf32>
    %82 = arith.mulf %31, %32 : vector<1x512xf32>
    %83 = arith.mulf %56, %58 : vector<1x512xf32>
    %84 = arith.addf %82, %83 : vector<1x512xf32>
    %85 = arith.subf %84, %81 : vector<1x512xf32>
    %cst_58 = arith.constant 9.99999997E-7 : f32
    %86 = vector.broadcast %cst_58 : f32 to vector<1x512xf32>
    %87 = arith.maximumf %85, %86 : vector<1x512xf32>
    %88 = tpu.reciprocal %87 {approx = true} : vector<1x512xf32> -> vector<1x512xf32>
    %89 = arith.mulf %81, %88 : vector<1x512xf32>
    %90 = arith.subf %35, %52 : vector<1x512xf32>
    %91 = arith.mulf %90, %90 : vector<1x512xf32>
    %92 = arith.subf %38, %54 : vector<1x512xf32>
    %93 = arith.mulf %92, %92 : vector<1x512xf32>
    %94 = arith.addf %91, %93 : vector<1x512xf32>
    %95 = arith.maximumf %25, %64 : vector<1x512xf32>
    %96 = arith.minimumf %15, %61 : vector<1x512xf32>
    %97 = arith.subf %95, %96 : vector<1x512xf32>
    %98 = arith.maximumf %30, %70 : vector<1x512xf32>
    %99 = arith.minimumf %20, %67 : vector<1x512xf32>
    %100 = arith.subf %98, %99 : vector<1x512xf32>
    %101 = arith.mulf %97, %97 : vector<1x512xf32>
    %102 = arith.mulf %100, %100 : vector<1x512xf32>
    %103 = arith.addf %101, %102 : vector<1x512xf32>
    %cst_59 = arith.constant 9.99999997E-7 : f32
    %104 = vector.broadcast %cst_59 : f32 to vector<1x512xf32>
    %105 = arith.maximumf %103, %104 : vector<1x512xf32>
    %106 = tpu.reciprocal %105 {approx = true} : vector<1x512xf32> -> vector<1x512xf32>
    %107 = arith.mulf %94, %106 : vector<1x512xf32>
    %108 = arith.subf %89, %107 : vector<1x512xf32>
    %cst_60 = arith.constant 9.99999997E-7 : f32
    %109 = vector.broadcast %cst_60 : f32 to vector<1x512xf32>
    %110 = arith.maximumf %32, %109 : vector<1x512xf32>
    %111 = math.absf %31 : vector<1x512xf32>
    %112 = arith.cmpf ogt, %111, %110 : vector<1x512xf32>
    %113 = arith.minimumf %111, %110 : vector<1x512xf32>
    %114 = arith.maximumf %111, %110 : vector<1x512xf32>
    %115 = tpu.reciprocal %114 {approx = true} : vector<1x512xf32> -> vector<1x512xf32>
    %116 = arith.mulf %113, %115 : vector<1x512xf32>
    %117 = arith.mulf %116, %116 : vector<1x512xf32>
    %cst_61 = arith.constant 0.00286622578 : f32
    %118 = vector.broadcast %cst_61 : f32 to vector<1x512xf32>
    %119 = arith.mulf %117, %118 : vector<1x512xf32>
    %cst_62 = arith.constant -0.0161657371 : f32
    %120 = vector.broadcast %cst_62 : f32 to vector<1x512xf32>
    %121 = arith.addf %120, %119 : vector<1x512xf32>
    %122 = arith.mulf %117, %121 : vector<1x512xf32>
    %cst_63 = arith.constant 0.0429096147 : f32
    %123 = vector.broadcast %cst_63 : f32 to vector<1x512xf32>
    %124 = arith.addf %123, %122 : vector<1x512xf32>
    %125 = arith.mulf %117, %124 : vector<1x512xf32>
    %cst_64 = arith.constant -0.0752896368 : f32
    %126 = vector.broadcast %cst_64 : f32 to vector<1x512xf32>
    %127 = arith.addf %126, %125 : vector<1x512xf32>
    %128 = arith.mulf %117, %127 : vector<1x512xf32>
    %cst_65 = arith.constant 0.106562637 : f32
    %129 = vector.broadcast %cst_65 : f32 to vector<1x512xf32>
    %130 = arith.addf %129, %128 : vector<1x512xf32>
    %131 = arith.mulf %117, %130 : vector<1x512xf32>
    %cst_66 = arith.constant -1.420890e-01 : f32
    %132 = vector.broadcast %cst_66 : f32 to vector<1x512xf32>
    %133 = arith.addf %132, %131 : vector<1x512xf32>
    %134 = arith.mulf %117, %133 : vector<1x512xf32>
    %cst_67 = arith.constant 0.199935511 : f32
    %135 = vector.broadcast %cst_67 : f32 to vector<1x512xf32>
    %136 = arith.addf %135, %134 : vector<1x512xf32>
    %137 = arith.mulf %117, %136 : vector<1x512xf32>
    %cst_68 = arith.constant -0.333331466 : f32
    %138 = vector.broadcast %cst_68 : f32 to vector<1x512xf32>
    %139 = arith.addf %138, %137 : vector<1x512xf32>
    %140 = arith.mulf %116, %117 : vector<1x512xf32>
    %141 = arith.mulf %140, %139 : vector<1x512xf32>
    %142 = arith.addf %116, %141 : vector<1x512xf32>
    %cst_69 = arith.constant 1.57079637 : f32
    %143 = vector.broadcast %cst_69 : f32 to vector<1x512xf32>
    %144 = arith.subf %143, %142 : vector<1x512xf32>
    %145 = arith.select %112, %144, %142 : vector<1x512xi1>, vector<1x512xf32>
    %cst_70 = arith.constant 0.000000e+00 : f32
    %146 = vector.broadcast %cst_70 : f32 to vector<1x512xf32>
    %147 = arith.cmpf olt, %31, %146 : vector<1x512xf32>
    %cst_71 = arith.constant 0.000000e+00 : f32
    %148 = vector.broadcast %cst_71 : f32 to vector<1x512xf32>
    %149 = arith.subf %148, %145 : vector<1x512xf32>
    %150 = arith.select %147, %149, %145 : vector<1x512xi1>, vector<1x512xf32>
    %cst_72 = arith.constant 9.99999997E-7 : f32
    %151 = vector.broadcast %cst_72 : f32 to vector<1x512xf32>
    %152 = arith.maximumf %58, %151 : vector<1x512xf32>
    %153 = math.absf %56 : vector<1x512xf32>
    %154 = arith.cmpf ogt, %153, %152 : vector<1x512xf32>
    %155 = arith.minimumf %153, %152 : vector<1x512xf32>
    %156 = arith.maximumf %153, %152 : vector<1x512xf32>
    %157 = tpu.reciprocal %156 {approx = true} : vector<1x512xf32> -> vector<1x512xf32>
    %158 = arith.mulf %155, %157 : vector<1x512xf32>
    %159 = arith.mulf %158, %158 : vector<1x512xf32>
    %cst_73 = arith.constant 0.00286622578 : f32
    %160 = vector.broadcast %cst_73 : f32 to vector<1x512xf32>
    %161 = arith.mulf %159, %160 : vector<1x512xf32>
    %cst_74 = arith.constant -0.0161657371 : f32
    %162 = vector.broadcast %cst_74 : f32 to vector<1x512xf32>
    %163 = arith.addf %162, %161 : vector<1x512xf32>
    %164 = arith.mulf %159, %163 : vector<1x512xf32>
    %cst_75 = arith.constant 0.0429096147 : f32
    %165 = vector.broadcast %cst_75 : f32 to vector<1x512xf32>
    %166 = arith.addf %165, %164 : vector<1x512xf32>
    %167 = arith.mulf %159, %166 : vector<1x512xf32>
    %cst_76 = arith.constant -0.0752896368 : f32
    %168 = vector.broadcast %cst_76 : f32 to vector<1x512xf32>
    %169 = arith.addf %168, %167 : vector<1x512xf32>
    %170 = arith.mulf %159, %169 : vector<1x512xf32>
    %cst_77 = arith.constant 0.106562637 : f32
    %171 = vector.broadcast %cst_77 : f32 to vector<1x512xf32>
    %172 = arith.addf %171, %170 : vector<1x512xf32>
    %173 = arith.mulf %159, %172 : vector<1x512xf32>
    %cst_78 = arith.constant -1.420890e-01 : f32
    %174 = vector.broadcast %cst_78 : f32 to vector<1x512xf32>
    %175 = arith.addf %174, %173 : vector<1x512xf32>
    %176 = arith.mulf %159, %175 : vector<1x512xf32>
    %cst_79 = arith.constant 0.199935511 : f32
    %177 = vector.broadcast %cst_79 : f32 to vector<1x512xf32>
    %178 = arith.addf %177, %176 : vector<1x512xf32>
    %179 = arith.mulf %159, %178 : vector<1x512xf32>
    %cst_80 = arith.constant -0.333331466 : f32
    %180 = vector.broadcast %cst_80 : f32 to vector<1x512xf32>
    %181 = arith.addf %180, %179 : vector<1x512xf32>
    %182 = arith.mulf %158, %159 : vector<1x512xf32>
    %183 = arith.mulf %182, %181 : vector<1x512xf32>
    %184 = arith.addf %158, %183 : vector<1x512xf32>
    %cst_81 = arith.constant 1.57079637 : f32
    %185 = vector.broadcast %cst_81 : f32 to vector<1x512xf32>
    %186 = arith.subf %185, %184 : vector<1x512xf32>
    %187 = arith.select %154, %186, %184 : vector<1x512xi1>, vector<1x512xf32>
    %cst_82 = arith.constant 0.000000e+00 : f32
    %188 = vector.broadcast %cst_82 : f32 to vector<1x512xf32>
    %189 = arith.cmpf olt, %56, %188 : vector<1x512xf32>
    %cst_83 = arith.constant 0.000000e+00 : f32
    %190 = vector.broadcast %cst_83 : f32 to vector<1x512xf32>
    %191 = arith.subf %190, %187 : vector<1x512xf32>
    %192 = arith.select %189, %191, %187 : vector<1x512xi1>, vector<1x512xf32>
    %193 = arith.subf %150, %192 : vector<1x512xf32>
    %194 = arith.mulf %193, %193 : vector<1x512xf32>
    %cst_84 = arith.constant 0.405284733 : f32
    %195 = vector.broadcast %cst_84 : f32 to vector<1x512xf32>
    %196 = arith.mulf %195, %194 : vector<1x512xf32>
    %cst_85 = arith.constant 1.000000e+00 : f32
    %197 = vector.broadcast %cst_85 : f32 to vector<1x512xf32>
    %198 = arith.subf %197, %89 : vector<1x512xf32>
    %199 = arith.addf %198, %196 : vector<1x512xf32>
    %cst_86 = arith.constant 9.99999997E-7 : f32
    %200 = vector.broadcast %cst_86 : f32 to vector<1x512xf32>
    %201 = arith.maximumf %199, %200 : vector<1x512xf32>
    %202 = tpu.reciprocal %201 {approx = true} : vector<1x512xf32> -> vector<1x512xf32>
    %203 = arith.mulf %196, %202 : vector<1x512xf32>
    %204 = arith.mulf %203, %196 : vector<1x512xf32>
    %205 = arith.subf %108, %204 : vector<1x512xf32>
    %cst_87 = arith.constant 1.000000e+00 : f32
    %206 = vector.broadcast %cst_87 : f32 to vector<1x512xf32>
    %207 = arith.subf %206, %205 : vector<1x512xf32>
    %208 = arith.mulf %207, %46 : vector<1x512xf32>
    %209 = arith.truncf %49 : vector<1x512xf32> to vector<1x512xbf16>
    %c0_88 = arith.constant 0 : index
    %c0_89 = arith.constant 0 : index
    %c0_90 = arith.constant 0 : index
    %210 = vector.load %arg10[%c0_88, %c0_89, %c0_90] : memref<1x1x512xbf16, #tpu.memory_space<vmem>>, vector<1x1x512xbf16>
    %211 = vector.shape_cast %210 : vector<1x1x512xbf16> to vector<1x512xbf16>
    %212 = vector.shape_cast %209 : vector<1x512xbf16> to vector<1x1x512xbf16>
    tpu.vector_store %arg10[%c0_88, %c0_89, %c0_90], %212 {strides = array<i32>} : memref<1x1x512xbf16, #tpu.memory_space<vmem>>, vector<1x1x512xbf16>,
    %213 = vector.shape_cast %50 : vector<1x512xf32> to vector<1x1x512xf32>
    %cst_91 = arith.constant dense<0.000000e+00> : vector<1xf32>
    %214 = vector.multi_reduction <add>, %213, %cst_91 [1, 2] : vector<1x1x512xf32> to vector<1xf32>
    %215 = vector.shape_cast %214 : vector<1xf32> to vector<1x1x1xf32>
    %216 = vector.extract %215[0, 0, 0] : f32 from vector<1x1x1xf32>
    %217 = vector.broadcast %216 : f32 to vector<1x1xf32>
    %218 = vector.shape_cast %208 : vector<1x512xf32> to vector<1x1x512xf32>
    %cst_92 = arith.constant dense<0.000000e+00> : vector<1xf32>
    %219 = vector.multi_reduction <add>, %218, %cst_92 [1, 2] : vector<1x1x512xf32> to vector<1xf32>
    %220 = vector.shape_cast %219 : vector<1xf32> to vector<1x1x1xf32>
    %221 = vector.extract %220[0, 0, 0] : f32 from vector<1x1x1xf32>
    %222 = vector.broadcast %221 : f32 to vector<1x1xf32>
    %223 = vector.shape_cast %43 : vector<1x512xf32> to vector<1x1x512xf32>
    %cst_93 = arith.constant dense<0.000000e+00> : vector<1xf32>
    %224 = vector.multi_reduction <add>, %223, %cst_93 [1, 2] : vector<1x1x512xf32> to vector<1xf32>
    %225 = vector.shape_cast %224 : vector<1xf32> to vector<1x1x1xf32>
    %226 = vector.extract %225[0, 0, 0] : f32 from vector<1x1x1xf32>
    %227 = vector.broadcast %226 : f32 to vector<1x1xf32>
    %228 = vector.shape_cast %46 : vector<1x512xf32> to vector<1x1x512xf32>
    %cst_94 = arith.constant dense<0.000000e+00> : vector<1xf32>
    %229 = vector.multi_reduction <add>, %228, %cst_94 [1, 2] : vector<1x1x512xf32> to vector<1xf32>
    %230 = vector.shape_cast %229 : vector<1xf32> to vector<1x1x1xf32>
    %231 = vector.extract %230[0, 0, 0] : f32 from vector<1x1x1xf32>
    %232 = vector.broadcast %231 : f32 to vector<1x1xf32>
    %233 = tpu.iota {dimensions = array<i32: 1>} : vector<1x128xi32>
    %c0_i32 = arith.constant 0 : i32
    %234 = vector.broadcast %c0_i32 : i32 to vector<1x128xi32>
    %235 = arith.cmpi eq, %233, %234 : vector<1x128xi32>
    %cst_95 = arith.constant 0.000000e+00 : f32
    %236 = vector.shape_cast %217 : vector<1x1xf32> to vector<1x1xf32>
    %237 = vector.broadcast %236 : vector<1x1xf32> to vector<1x128xf32>
    %238 = vector.broadcast %cst_95 : f32 to vector<1x128xf32>
    %239 = arith.select %235, %237, %238 : vector<1x128xi1>, vector<1x128xf32>
    %c1_i32 = arith.constant 1 : i32
    %240 = vector.broadcast %c1_i32 : i32 to vector<1x128xi32>
    %241 = arith.cmpi eq, %233, %240 : vector<1x128xi32>
    %cst_96 = arith.constant 0.000000e+00 : f32
    %242 = vector.shape_cast %222 : vector<1x1xf32> to vector<1x1xf32>
    %243 = vector.broadcast %242 : vector<1x1xf32> to vector<1x128xf32>
    %244 = vector.broadcast %cst_96 : f32 to vector<1x128xf32>
    %245 = arith.select %241, %243, %244 : vector<1x128xi1>, vector<1x128xf32>
    %246 = arith.addf %239, %245 : vector<1x128xf32>
    %c2_i32 = arith.constant 2 : i32
    %247 = vector.broadcast %c2_i32 : i32 to vector<1x128xi32>
    %248 = arith.cmpi eq, %233, %247 : vector<1x128xi32>
    %cst_97 = arith.constant 0.000000e+00 : f32
    %249 = vector.shape_cast %227 : vector<1x1xf32> to vector<1x1xf32>
    %250 = vector.broadcast %249 : vector<1x1xf32> to vector<1x128xf32>
    %251 = vector.broadcast %cst_97 : f32 to vector<1x128xf32>
    %252 = arith.select %248, %250, %251 : vector<1x128xi1>, vector<1x128xf32>
    %253 = arith.addf %246, %252 : vector<1x128xf32>
    %c3_i32 = arith.constant 3 : i32
    %254 = vector.broadcast %c3_i32 : i32 to vector<1x128xi32>
    %255 = arith.cmpi eq, %233, %254 : vector<1x128xi32>
    %cst_98 = arith.constant 0.000000e+00 : f32
    %256 = vector.shape_cast %232 : vector<1x1xf32> to vector<1x1xf32>
    %257 = vector.broadcast %256 : vector<1x1xf32> to vector<1x128xf32>
    %258 = vector.broadcast %cst_98 : f32 to vector<1x128xf32>
    %259 = arith.select %255, %257, %258 : vector<1x128xi1>, vector<1x128xf32>
    %260 = arith.addf %253, %259 : vector<1x128xf32>
    %261 = vector.shape_cast %260 : vector<1x128xf32> to vector<1x1x1x128xf32>
    %c0_99 = arith.constant 0 : index
    %c0_100 = arith.constant 0 : index
    %c0_101 = arith.constant 0 : index
    %c0_102 = arith.constant 0 : index
    %262 = vector.load %arg11[%c0_99, %c0_100, %c0_101, %c0_102] : memref<1x1x1x128xf32, #tpu.memory_space<vmem>>, vector<1x1x1x128xf32>
    tpu.vector_store %arg11[%c0_99, %c0_100, %c0_101, %c0_102], %261 {strides = array<i32>} : memref<1x1x1x128xf32, #tpu.memory_space<vmem>>, vector<1x1x1x128xf32>,
    return
  }
  func.func @transform_0(%arg0: i32, %arg1: i32) -> (i32, i32, i32) {
    %c0_i32 = arith.constant 0 : i32
    %c0_i32_0 = arith.constant 0 : i32
    return %arg1, %arg0, %c0_i32 : i32, i32, i32
  }
  func.func @transform_1(%arg0: i32, %arg1: i32) -> (i32, i32, i32, i32) {
    %c0_i32 = arith.constant 0 : i32
    %c0_i32_0 = arith.constant 0 : i32
    %c0_i32_1 = arith.constant 0 : i32
    return %arg1, %c0_i32, %arg0, %c0_i32_0 : i32, i32, i32, i32
  }
  func.func @transform_2(%arg0: i32, %arg1: i32) -> (i32, i32, i32) {
    %c0_i32 = arith.constant 0 : i32
    %c0_i32_0 = arith.constant 0 : i32
    return %arg1, %arg0, %c0_i32 : i32, i32, i32
  }
  func.func @transform_3(%arg0: i32, %arg1: i32) -> (i32, i32, i32) {
    %c0_i32 = arith.constant 0 : i32
    %c0_i32_0 = arith.constant 0 : i32
    return %arg1, %arg0, %c0_i32 : i32, i32, i32
  }
  func.func @transform_4(%arg0: i32, %arg1: i32) -> (i32, i32, i32) {
    %c0_i32 = arith.constant 0 : i32
    %c0_i32_0 = arith.constant 0 : i32
    return %arg1, %arg0, %c0_i32 : i32, i32, i32
  }
  func.func @transform_5(%arg0: i32, %arg1: i32) -> (i32, i32, i32, i32) {
    %c0_i32 = arith.constant 0 : i32
    %c0_i32_0 = arith.constant 0 : i32
    %c0_i32_1 = arith.constant 0 : i32
    return %arg1, %c0_i32, %arg0, %c0_i32_0 : i32, i32, i32, i32
  }
  func.func @transform_6(%arg0: i32, %arg1: i32) -> (i32, i32) {
    %c0_i32 = arith.constant 0 : i32
    %c0_i32_0 = arith.constant 0 : i32
    return %arg0, %c0_i32 : i32, i32
  }
  func.func @transform_7(%arg0: i32, %arg1: i32) -> (i32, i32) {
    %c0_i32 = arith.constant 0 : i32
    %c0_i32_0 = arith.constant 0 : i32
    return %arg0, %c0_i32 : i32, i32
  }
  func.func @transform_8(%arg0: i32, %arg1: i32) -> (i32, i32, i32) {
    %c0_i32 = arith.constant 0 : i32
    %c0_i32_0 = arith.constant 0 : i32
    return %arg1, %arg0, %c0_i32 : i32, i32, i32
  }
  func.func @transform_9(%arg0: i32, %arg1: i32) -> (i32, i32, i32, i32) {
    %c0_i32 = arith.constant 0 : i32
    %c0_i32_0 = arith.constant 0 : i32
    %c0_i32_1 = arith.constant 0 : i32
    return %arg1, %arg0, %c0_i32, %c0_i32_0 : i32, i32, i32, i32
  }
}

</mosaic_0001>

<bundles_post_ra>
// kernel: tpu_custom_call.1
= control target key start
LH: loop header
LB: loop body
LE: loop exit
PB: predicated region body
PF: predicated region fallthrough
CT: control target
= control target key end

     0   :  { %s2108_s0 = inlined_call_operand.hbm [shape: f32[2,1,512], index: 0, kind: input, shape index: {}]   ;;  %s2109_s1 = inlined_call_operand.hbm [shape: f32[2,4,1,512], index: 1, kind: input, shape index: {}]   ;;  %s2110_s2 = inlined_call_operand.hbm [shape: f32[2,1,512], index: 2, kind: input, shape index: {}]   ;;  %s2111_s3 = inlined_call_operand.vmem [shape: bf16[2,1,512], index: 3, kind: input, shape index: {}]   ;;  %s2112_s4 = inlined_call_operand.vmem [shape: bf16[2,1,512], index: 4, kind: input, shape index: {}]   ;;  %s2113_s5 = inlined_call_operand.vmem [shape: f32[2,4,1,512], index: 5, kind: input, shape index: {}]   ;;  %s2114_s6 = inlined_call_operand.hbm [shape: f32[1,512], index: 6, kind: input, shape index: {}]   ;;  %s2115_s7 = inlined_call_operand.vmem [shape: f32[1,512], index: 7, kind: input, shape index: {}]   ;;  %s2116_s8 = inlined_call_operand.vmem [shape: bf16[2,1,512], index: 8, kind: output, shape index: {0}]   ;;  %s2117_s9 = inlined_call_operand.hbm [shape: f32[2,1,1,128], index: 9, kind: output, shape index: {1}]  }
   0x1   :  { %2129 = sst [smem:[#allocation21_spill]] %s2108_s0 }
   0x2   :  { %2130 = sst [smem:[#allocation22_spill]] %s2109_s1 }
   0x3   :  { %2131 = sst [smem:[#allocation23_spill]] %s2114_s6 }
   0x4   :  { %15 = vsyncpa [#allocation3], 0 }
   0x5   :  { %17 = vsyncpa [#allocation3 + $0x1], 0 }
   0x6   :  { %18 = vsyncpa [#allocation6], 0 }
   0x7   :  { %20 = vsyncpa [#allocation6 + $0x1], 0 }
   0x8   :  { %21 = vsyncpa [#allocation9], 0 }
   0x9   :  { %22 = vsyncpa [#allocation4], 0 }
   0xa   :  { %24 = vsyncpa [#allocation4 + $0x1], 0  ;;  %s1683_s30 = smov 0   ;;  %s1685_s10 = smov 0  }
   0xb   :  { %s1687_s11 = smov 0   ;;  %s1689_s12 = smov 0  }
   0xc   :  { %s1691_s13 = smov 0   ;;  %s1693_s14 = smov 0  }
   0xd LB: > { %2132 = sst [smem:[#allocation15_spill]] %s1603_s30  ;;  %s39_s15 = sadd.s32 1, %s1619_s13  ;;  %s1623_s14 = sphi %s1693_s14, %s30_s14   ;;  %s1619_s13 = sphi %s1691_s13, %s2171_s13   ;;  %s1615_s12 = sphi %s1689_s12, %s2170_s12   ;;  %s1611_s11 = sphi %s1687_s11, %s2166_s11   ;;  %s1607_s10 = sphi %s1685_s10, %s2169_s10   ;;  %s1603_s30 = sphi %s1683_s30, %s2168_s30  }
   0xe   : > { %2133 = sst [smem:[#allocation16_spill]] %s1611_s11  ;;  %s51_s16 = sadd.s32 1, %s1611_s11 }
   0xf   : > { %2134 = sst [smem:[#allocation17_spill]] %s1623_s14  ;;  %p40_p0 = scmp.ge.s32.totalorder %s39_s15, 2 }
  0x10   : > { %p58_p1 = scmp.ne.s32.totalorder %s1611_s11, %s1607_s10  ;;  %p59_p2 = scmp.eq.s32.totalorder %s1623_s14, 0 }
  0x11   : > { %s2173_s15 = smov (%p40_p0, %s39_s15), 0  ;;  %p1358_p5 = scmp.lt.s32.totalorder %s1623_s14, 2 }
  0x12   : > { %2135 = sst [smem:[#allocation18_spill]] %s2173_s15  ;;  %p60_p4 = por %p59_p2, %p58_p1 }
  0x13   : > { %s46_s17 = ssub.s32 %s1619_s13, %s2173_s15  ;;  %s1728_s18 = sand.u32 1, %s1611_s11  }
  0x14   : > { %p49_p6 = scmp.eq.s32.totalorder %s46_s17, 0  ;;  %p1730_p7 = pnand %p1358_p5, %p60_p4 }
  0x15   : > { %s378_s20 = sand.u32 1, %s1623_s14   ;;  %s1290_s21 = sshll.u32 %s1728_s18, 4 }
  0x16   : > { %s1737_s22 = scalar_select %p49_p6, %s1611_s11, %s51_s16  }
  0x17   : > { %s1317_s23 = sshll.u32 %s1619_s13, 8  ;;  %s2138_s1 = sld [smem:[#allocation22_spill]] }
  0x18   : > { %2137 = sst [smem:[#allocation19_spill]] %s1737_s22  ;;  %s382_s27 = scalar_lea.vmem [#allocation5], %s1290_s21 }
  0x19   : > { %s391_s28 = sshll.u32 %s382_s27, 4  ;;  %s1743_s29 = scalar_lea.sflag [#allocation6], %s378_s20  ;;  %s392_s28 = int_to_ptr.vmem [resolvable:$true] %s391_s28 }
  0x1a   : > { %p2123_p8 = pneg %p1730_p7  ;;  %s1438_s17 = scalar_lea.vmem %s392_s28, 256 }
  0x1b   : > { %p1439_p9 = scmp.ne.s32.totalorder %s392_s28, %s1438_s17  ;;  %s1625_s16 = smov [#allocation5]  }
  0x1c   : > { %s1443_s15 = sshll.u32 %s1625_s16, 4  ;;  %s1444_s15 = int_to_ptr.vmem [resolvable:$false] %s1443_s15 }
  0x1d   : > { %s390_s26 = scalar_lea.hbm %s2138_s1, %s1317_s23  ;;  %p1441_p10 = pnand %p1439_p9, %p2123_p8 }
  0x1e   : > { %s1445_s22 = scalar_lea.vmem %s1444_s15, 512  ;;  %p1446_p12 = scmp.lt.s32.totalorder %s392_s28, %s1444_s15 }
  0x1f   : > { %p1442_p11 = pneg %p1441_p10  ;;  %p1447_p13 = scmp.lt.s32.totalorder %s1445_s22, %s1438_s17 }
  0x21   : > { %p1448_p0 = por %p1447_p13, %p1446_p12 }
  0x23   : > { %p1449_p2 = pnand %p1448_p0, %p1442_p11 }
  0x25   : > { %1452 = shalt.err (!%p1449_p2)
}
  0x26   : > { %s1626_s21 = smov 64   ;;  %s1627_s20 = smov 4  }
  0x27   : > { %1349 = dma.hbm_to_vmem [thread:$0]  (!%p1730_p7), %s390_s26, 256, %s392_s28, %s1743_s29, %s1626_s21, %s1626_s21, %s1627_s20  }
  0x28   : > { %s1754_s23 = sadd.s32 4294967295, %s1623_s14   ;;  %s1282_s15 = sadd.s32 4294967294, %s1623_s14  }
  0x29   : > { %p64_p4 = scmp.ne.s32.totalorder %s1607_s10, %s1603_s30  ;;  %p2122_p5 = scmp.eq.s32.totalorder %s1754_s23, 0 }
  0x2a   : > { %p310_p6 = scmp.eq.s32.totalorder %s1754_s23, 1  ;;  %p316_p9 = scmp.eq.s32.totalorder %s1282_s15, 1 }
  0x2b   : > { %p1283_p10 = scmp.ge.s32.totalorder %s1623_s14, 1  ;;  %p1764_p11 = por %p2122_p5, %p64_p4 }
  0x2c   : > { %p1771_p12 = por %p310_p6, %p58_p1  ;;  %p1775_p13 = por %p316_p9, %p64_p4 }
  0x2d   : > { %p323_p0 = scmp.lt.s32.totalorder %s1623_s14, 3  ;;  %s1628_s27 = smov [#allocation8]  }
  0x2e   : > { %s2140_s24 = scalar_select %p1771_p12, 1, 0 }
  0x2f   : > { %s2141_s25 = scalar_select %p1775_p13, 1, 0 }
  0x30   : > { %p1780_p2 = pnand %p1283_p10, %p323_p0  ;;  %s339_s28 = sshll.u32 %s1628_s27, 4  ;;  %s340_s28 = int_to_ptr.vmem [resolvable:$true] %s339_s28 }
  0x31   : > { %2142 = sst [smem:[#allocation20_spill]] %s2141_s25  ;;  %s2124_s17 = sshll.u32 %s1728_s18, 2 }
  0x32   : > { %p1339_p3 = pneg %p1780_p2  ;;  %s2126_s16 = sshll.u32 %s1619_s13, 6 }
  0x33   : > { %s2145_s0 = sld [smem:[#allocation21_spill]]  ;;  %s361_s11 = scalar_lea.vmem [#allocation2], %s2124_s17 }
  0x34   : > { %p1790_p1 = pnand %p1339_p3, %p2122_p5  ;;  %s371_s27 = sshll.u32 %s361_s11, 4  ;;  %s372_s27 = int_to_ptr.vmem [resolvable:$true] %s371_s27 }
  0x35   : > { %s1464_s14 = scalar_lea.vmem %s340_s28, 64  ;;  %p1472_p10 = scmp.lt.s32.totalorder %s340_s28, %s340_s28 }
  0x36   : > { %p1455_p4 = pneg %p1790_p1  ;;  %p1465_p6 = scmp.ne.s32.totalorder %s340_s28, %s1464_s14 }
  0x37   : > { %p1473_p0 = scmp.lt.s32.totalorder %s1464_s14, %s1464_s14 }
  0x38   : > { %p1467_p9 = pnand %p1465_p6, %p1455_p4 }
  0x39   : > { %s1799_s1 = scalar_lea.hbm %s2145_s0, %s2126_s16  ;;  %p1474_p5 = por %p1473_p0, %p1472_p10 }
  0x3a   : > { %p1468_p3 = pneg %p1467_p9 }
  0x3c   : > { %p1475_p8 = pnand %p1474_p5, %p1468_p3 }
  0x3e   : > { %1478 = shalt.err (!%p1475_p8)
}
  0x3f   : > { %s2146_s6 = sld [smem:[#allocation23_spill]]  ;;  %s358_s11 = scalar_lea.sflag [#allocation3], %s1728_s18 }
  0x40   : > { %s1492_s17 = scalar_lea.vmem %s372_s27, 64  ;;  %p2147_p12 = pneg %p1730_p7 }
  0x41   : > { %p1493_p13 = scmp.ne.s32.totalorder %s372_s27, %s1492_s17  ;;  %s1629_s16 = smov [#allocation2]  }
  0x42   : > { %s1497_s14 = sshll.u32 %s1629_s16, 4  ;;  %s1498_s14 = int_to_ptr.vmem [resolvable:$false] %s1497_s14 }
  0x43   : > { %p1495_p4 = pnand %p1493_p13, %p2147_p12  ;;  %s1499_s0 = scalar_lea.vmem %s1498_s14, 128 }
  0x44   : > { %p1500_p8 = scmp.lt.s32.totalorder %s372_s27, %s1498_s14  ;;  %p1501_p5 = scmp.lt.s32.totalorder %s1499_s0, %s1492_s17 }
  0x45   : > { %1342 = dma.hbm_to_vmem [thread:$0]  (!%p1790_p1), %s2146_s6, 64, %s340_s28, [#allocation9]  }
  0x46   : > { %p1496_p6 = pneg %p1495_p4  ;;  %p1502_p9 = por %p1501_p5, %p1500_p8 }
  0x48   : > { %p1503_p3 = pnand %p1502_p9, %p1496_p6 }
  0x4a   : > { %1506 = shalt.err (!%p1503_p3)
}
  0x4b   : > { %1346 = dma.hbm_to_vmem [thread:$0]  (!%p1730_p7), %s1799_s1, 64, %s372_s27, %s358_s11  }
  0x4c   : > { %s2148_s28 = sshll.u32 %s1619_s13, 6  ;;  %s2149_s16 = sshll.u32 %s1728_s18, 2 }
  0x4d   : > { %s413_s15 = scalar_lea.hbm %s2110_s2, %s2148_s28  ;;  %s405_s6 = scalar_lea.vmem [#allocation7], %s2149_s16 }
  0x4e   : > { %s415_s25 = sshll.u32 %s405_s6, 4  ;;  %p2150_p13 = pneg %p1730_p7  ;;  %s416_s25 = int_to_ptr.vmem [resolvable:$true] %s415_s25 }
  0x4f   : > { %s1520_s0 = scalar_lea.vmem %s416_s25, 64  ;;  %s1630_s17 = smov [#allocation7]  }
  0x50   : > { %p1521_p12 = scmp.ne.s32.totalorder %s416_s25, %s1520_s0  ;;  %s1525_s14 = sshll.u32 %s1630_s17, 4  ;;  %s1526_s14 = int_to_ptr.vmem [resolvable:$false] %s1525_s14 }
  0x51   : > { %s1527_s30 = scalar_lea.vmem %s1526_s14, 128  ;;  %p1528_p0 = scmp.lt.s32.totalorder %s416_s25, %s1526_s14 }
  0x52   : > { %p1523_p1 = pnand %p1521_p12, %p2150_p13  ;;  %p1529_p4 = scmp.lt.s32.totalorder %s1527_s30, %s1520_s0 }
  0x54   : > { %p1524_p10 = pneg %p1523_p1  ;;  %p1530_p6 = por %p1529_p4, %p1528_p0 }
  0x56   : > { %p1531_p8 = pnand %p1530_p6, %p1524_p10 }
  0x58   : > { %1534 = shalt.err (!%p1531_p8)
}
  0x59   : > { %1352 = dma.hbm_to_vmem [thread:$0]  (!%p1730_p7), %s413_s15, 64, %s416_s25, %s1743_s29  }
  0x5a   : > { %457 = sbr.rel (%p1780_p2) target bundleno = 446 (0x1be), region = 52  ;;  %s1833_s1 = sand.u32 (!%p1780_p2), 1, %s1607_s10  }
  0x5b   : > { %s1297_s6 = sshll.u32 (!%p1780_p2), %s1833_s1, 2  ;;  %s460_s18 = scalar_lea.sflag (!%p1780_p2), [#allocation3], %s1833_s1 }
  0x5c   : > { %s463_s27 = scalar_lea.vmem (!%p1780_p2), [#allocation2], %s1297_s6 }
  0x5f   : > { %1586 = dma.done.wait (%p1764_p11), %s460_s18, 64  }
  0x60   : > { %1588 = vsyncadd (%p1764_p11), %s460_s18, 4294967232  ;;  %s468_s30 = sand.u32 1, %s1754_s23   ;;  %s1298_s19 = sshll.u32 %s1833_s1, 4 }
  0x61   : > { %s469_s29 = scalar_lea.sflag [#allocation6], %s468_s30  ;;  %s1843_s25 = scalar_lea.vmem [#allocation5], %s1298_s19 }
  0x62   : > { %1590 = dma.done.wait (%p1764_p11), %s469_s29, 320  }
  0x63   : > { %1592 = vsyncadd (%p1764_p11), %s469_s29, 4294966976  ;;  %s1849_s26 = scalar_lea.vmem [#allocation7], %s1297_s6  ;;  %p2151_p7 = scmp.eq.s32.totalorder %s1754_s23, 0 }
  0x65   : > { %1594 = dma.done.wait (%p2151_p7), [#allocation9], 64   ;;  %p2152_p2 = pmov %p2151_p7 }
  0x66   : > { %p565_p5 = scmp.lt.s32.totalorder %s1615_s12, 1  ;;  %v640_v0 = vlaneseq  ;;  %v601_v2 = vld [vmem:[%s463_s27] sm:$0xf]  ;;  %vm829_vm0 = vcmask 1040384   ;;  %v608_v17 = vld [vmem:[%s1843_s25] sm:$0xf] }
  0x67   : > { %1596 = vsyncadd (%p2152_p2), [#allocation9], 4294967232  ;;  %v602_v6 = vmul.f32 0.5, %v601_v2  ;;  %v606_v22 = vld [vmem:[#allocation8] sm:$0xf]  ;;  %v609_v34 = vmul.f32 8.0, %v608_v17 }
  0x68   : > { %s1857_s11 = scalar_select %p565_p5, %s1615_s12, 1  ;;  %v1871_v1 = vshrl.u32 %v640_v0, 7  ;;  %v1305_v23 = vld [vmem:[%s1843_s25 + $0x4] sm:$0xf]  ;;  %v1306_v28 = vld [vmem:[%s1843_s25 + $0x8] sm:$0xf] }
  0x69   : > { %1413 = vtanh.f32 %v602_v6  ;;  %v1307_v29 = vld [vmem:[%s1843_s25 + $0xc] sm:$0xf]  ;;  %v607_v33 = vld [vmem:[%s2115_s7] sm:$0xf]  ;;  %v1631_v35 = vmov 1966171168   ;;  %v1912_v41 = vadd.f32 %v609_v34, %v606_v22 }
  0x6a   : > { %s1860_s28 = sshll.u32 %s1857_s11, 2  ;;  %v932_v4 = vsub.s32 4, %v1871_v1  ;;  %v936_v5 = vsub.s32 6, %v1871_v1  ;;  %v1878_v9 = vsub.s32 0, %v1871_v1  ;;  %v1881_v10 = vsub.s32 2, %v1871_v1  ;;  %s1303_s14 = sshll.u32 %s1857_s11, 4 }
  0x6b   : > { %s572_s20 = scalar_lea.vmem %s2111_s3, %s1860_s28  ;;  %s580_s23 = scalar_lea.vmem %s2112_s4, %s1860_s28  ;;  %v638_v36 = vunpack.c.l.s4 %v1631_v35  ;;  %v613_v39 = vmul.f32 8.0, %v1305_v23  ;;  %v617_v42 = vmul.f32 8.0, %v1306_v28  ;;  %v621_v43 = vmul.f32 8.0, %v1307_v29  ;;  %v629_v60 = vld [vmem:[%s1849_s26] sm:$0xf] }
  0x6c   : > { %v630_v3 = vld [vmem:[%s572_s20] sm:$0xf]  ;;  %vm830_vm1 = vsmask.f32 256  ;;  %vm832_vm2 = vcmask 1041409   ;;  %s588_s27 = scalar_lea.vmem %s2113_s5, %s1303_s14  ;;  %v1963_v17 = vsub.s32 1, %v1871_v1  ;;  %s600_s29 = scalar_lea.vmem %s2116_s8, %s1860_s28 }
  0x6d   : > { %v1875_v7 = vunpack.c.l.bf16 %v630_v3  ;;  %v632_v8 = vld [vmem:[%s580_s23] sm:$0xf]  ;;  %v1914_v46 = vadd.f32 %v613_v39, %v607_v33  ;;  %v1916_v47 = vadd.f32 %v617_v42, %v606_v22  ;;  %v1918_v48 = vadd.f32 %v621_v43, %v607_v33  ;;  %v1942_v62 = vld [vmem:[%s588_s27 + $0x4] sm:$0xf]  ;;  %v1944_v2 = vld [vmem:[%s588_s27 + $0xc] sm:$0xf] }
  0x6e   : > { %v1883_v11 = vunpack.c.l.bf16 %v632_v8  ;;  %v639_v50 = vunpack.c.0.s8 %v638_v36  ;;  %v1940_v61 = vld [vmem:[%s588_s27] sm:$0xf]  ;;  %vm833_vm3 = vsmask.f32 1280  ;;  %v1953_v8 = vld [vmem:[%s588_s27 + $0x8] sm:$0xf]  ;;  %vm1973_vm4 = vmand %vm829_vm0, %vm830_vm1 }
  0x6f   : > { %v925_v12 = vrot.slane %v1875_v7, %v1878_v9  ;;  %v929_v13 = vrot.slane %v1875_v7, %v1881_v10  ;;  %v933_v14 = vrot.slane %v1875_v7, %v932_v4  ;;  %v937_v15 = vrot.slane %v1875_v7, %v936_v5  ;;  %vm1986_vm5 = vmand %vm832_vm2, %vm833_vm3  ;;  %s1313_s22 = sshll.u32 %s1615_s12, 4  ;;  %s564_s21 = scalar_lea.vmem [#allocation10], %s1833_s1 }
  0x70   : > { %v961_v16 = vrot.slane %v1883_v11, %v1878_v9  ;;  %v965_v20 = vrot.slane %v1883_v11, %v1881_v10  ;;  %v969_v21 = vrot.slane %v1883_v11, %v932_v4  ;;  %v973_v27 = vrot.slane %v1883_v11, %v936_v5  ;;  %vm835_vm9 = vmor %vm1986_vm5, %vm1973_vm4  ;;  %s1037_s20 = sshll.u32 %s564_s21, 4  ;;  %s1035_s23 = scalar_lea.hbm %s2117_s9, %s1313_s22  ;;  %s1038_s20 = int_to_ptr.vmem [resolvable:$true] %s1037_s20 }
  0x71   : > { %v942_v18 = vsel %vm829_vm0, %v925_v12, 0.0  ;;  %v943_v19 = vsel %vm829_vm0, %v929_v13, 0.0  ;;  %v945_v25 = vsel %vm829_vm0, %v933_v14, 0.0  ;;  %v947_v26 = vsel %vm829_vm0, %v937_v15, 0.0  ;;  %s1021_s0 = scalar_lea.sflag [#allocation4], %s1833_s1  ;;  %s1535_s17 = scalar_lea.vmem %s1038_s20, 16 }
  0x72   : > { %v944_v24 = vadd.f32 %v943_v19, %v942_v18  ;;  %v978_v30 = vsel %vm829_vm0, %v961_v16, 0.0  ;;  %v979_v31 = vsel %vm829_vm0, %v965_v20, 0.0  ;;  %v981_v32 = vsel %vm829_vm0, %v969_v21, 0.0  ;;  %p1536_p11 = scmp.ne.s32.totalorder %s1038_s20, %s1535_s17  ;;  %p2159_p9 = scmp.ne.s32.totalorder %s2140_s24, 0 }
  0x73   : > { %v980_v38 = vadd.f32 %v979_v31, %v978_v30  ;;  %v983_v40 = vsel %vm829_vm0, %v973_v27, 0.0  ;;  %v1923_v51 = vsub.f32 %v1916_v47, %v1912_v41  ;;  %v1927_v52 = vsub.f32 %v1918_v48, %v1914_v46  ;;  %s1632_s14 = smov [#allocation10]  }
  0x74   : > { %v946_v37 = vadd.f32 %v945_v25, %v944_v24  ;;  %v1935_v57 = vsub.s32 %v639_v50, %v1871_v1  ;;  %v1966_v18 = vsub.s32 3, %v1871_v1  ;;  %v1982_v22 = vand.u32 2147483647, %v1953_v8  ;;  %p1537_p3 = pnand %p1536_p11, %p2159_p9  ;;  %s1539_s6 = sshll.u32 %s1632_s14, 4  ;;  %s1540_s6 = int_to_ptr.vmem [resolvable:$false] %s1539_s6 }
  0x75   : > { %v982_v45 = vadd.f32 %v981_v32, %v980_v38  ;;  %v625_v53 = vmul.f32 0.5, %v1923_v51  ;;  %v627_v54 = vmul.f32 0.5, %v1927_v52  ;;  %v1949_v5 = vmax.f32 %v1927_v52, 1e-06  ;;  %s1541_s12 = scalar_lea.vmem %s1540_s6, 32  ;;  %p1542_p13 = scmp.lt.s32.totalorder %s1038_s20, %s1540_s6 }
  0x76   : > { %v948_v44 = vadd.f32 %v947_v26, %v946_v37  ;;  %v1414_v55 = vpop.eup %1413  ;;  %v643_v6 = vrot.slane %v1875_v7, %v1935_v57  ;;  %v1956_v12 = vand.u32 2147483647, %v1923_v51  ;;  %v1960_v14 = vrot.slane %v1883_v11, %v1935_v57  ;;  %p1538_p12 = pneg %p1537_p3  ;;  %p1543_p1 = scmp.lt.s32.totalorder %s1541_s12, %s1535_s17 }
  0x77   : > { %v984_v49 = vadd.f32 %v983_v40, %v982_v45  ;;  %v604_v56 = vmul.f32 0.5, %v1414_v55  ;;  %v626_v58 = vadd.f32 %v625_v53, %v1912_v41  ;;  %v628_v59 = vadd.f32 %v627_v54, %v1914_v46  ;;  %v844_v53 = vld [vmem:[%s600_s29] sm:$0xf] }
  0x78   : > { %949 = vadd.xlane.f32.xlu1 %v948_v44  ;;  %v1969_v7 = vmax.f32 %v1944_v2, 1e-06  ;;  %v707_v21 = vmax.f32 %v1956_v12, %v1949_v5  ;;  %vm836_vm6 = vcmask 1042434   ;;  %vm837_vm7 = vsmask.f32 2304  ;;  %p1544_p10 = por %p1543_p1, %p1542_p13 }
  0x79   : > { %v605_v63 = vadd.f32 0.5, %v604_v56  ;;  %v685_v3 = vsub.f32 %v626_v58, %v1940_v61  ;;  %v687_v4 = vsub.f32 %v628_v59, %v1942_v62  ;;  %vm840_vm8 = vcmask 1043459   ;;  %vm838_vm10 = vmand %vm836_vm6, %vm837_vm7 }
  0x7a   : > { %1415 = vrcp.f32 %v707_v21  ;;  %v737_v25 = vmax.f32 %v1982_v22, %v1969_v7  ;;  %vm841_vm11 = vsmask.f32 3328  ;;  %vm2013_vm12 = vmor %vm838_vm10, %vm835_vm9  ;;  %v706_v54 = vmin.f32 %v1956_v12, %v1949_v5  ;;  %p1545_p0 = pnand %p1544_p10, %p1538_p12 }
  0x7b   : > { %v634_v13 = vsub.f32 %v629_v60, %v605_v63  ;;  %v686_v15 = vmul.f32 %v685_v3, %v685_v3  ;;  %v688_v16 = vmul.f32 %v687_v4, %v687_v4  ;;  %vm842_vm13 = vmand %vm840_vm8, %vm841_vm11  ;;  %v663_v56 = vmul.f32 0.5, %v1953_v8 }
  0x7c   : > { %985 = vadd.xlane.f32.xlu1 %v984_v49  ;;  %1417 = vrcp.f32 %v737_v25  ;;  %vm843_vm14 = vmor %vm842_vm13, %vm2013_vm12  ;;  %v666_v58 = vmul.f32 0.5, %v1944_v2  ;;  %vm705_vm15 = vcmp.gt.f32.partialorder %v1956_v12, %v1949_v5  ;;  %vm735_vm1 = vcmp.gt.f32.partialorder %v1982_v22, %v1969_v7 }
  0x7d   : > { %v635_v19 = vmul.f32 %v634_v13, %v634_v13  ;;  %v1977_v11 = vadd.f32 %v688_v16, %v686_v15  ;;  %v664_v3 = vsub.f32 %v1940_v61, %v663_v56  ;;  %v665_v4 = vadd.f32 %v663_v56, %v1940_v61 }
  0x7e   : > { %v668_v13 = vadd.f32 %v1942_v62, %v666_v58  ;;  %vm730_vm2 = vcmp.lt.f32.partialorder %v1923_v51, 0.0  ;;  %vm760_vm3 = vcmp.lt.f32.partialorder %v1953_v8, 0.0 }
  0x7f   : > { %v655_v23 = vmul.f32 %v1960_v14, %v635_v19  ;;  %v645_v24 = vmul.f32 %v643_v6, %v635_v19  ;;  %v667_v6 = vsub.f32 %v1942_v62, %v666_v58  ;;  %v669_v20 = vmin.f32 %v1916_v47, %v665_v4 }
  0x80   : > { %v670_v21 = vmax.f32 %v1912_v41, %v664_v3  ;;  %v673_v1 = vmin.f32 %v1918_v48, %v668_v13 }
  0x81   : > { %v851_v26 = vrot.slane %v655_v23, %v1878_v9  ;;  %v855_v27 = vrot.slane %v655_v23, %v1963_v17  ;;  %v859_v28 = vrot.slane %v655_v23, %v1881_v10  ;;  %v863_v29 = vrot.slane %v655_v23, %v1966_v18 }
  0x82   : > { %v779_v30 = vrot.slane %v645_v24, %v1878_v9  ;;  %v783_v31 = vrot.slane %v645_v24, %v1963_v17  ;;  %v787_v32 = vrot.slane %v645_v24, %v1881_v10  ;;  %v791_v33 = vrot.slane %v645_v24, %v1966_v18 }
  0x83   : > { %v869_v34 = vsel %vm829_vm0, %v851_v26, 0.0  ;;  %v870_v35 = vsel %vm829_vm0, %v855_v27, 0.0  ;;  %v872_v36 = vsel %vm829_vm0, %v859_v28, 0.0  ;;  %v874_v42 = vsel %vm829_vm0, %v863_v29, 0.0 }
  0x84   : > { %v871_v37 = vadd.f32 %v870_v35, %v869_v34  ;;  %v1311_v38 = vpack.c.bf16 %v783_v31, %v779_v30  ;;  %v1312_v39 = vpack.c.bf16 %v791_v33, %v787_v32  ;;  %v674_v23 = vmax.f32 %v1914_v46, %v667_v6 }
  0x85   : > { %v671_v27 = vsub.f32 %v669_v20, %v670_v21  ;;  %v678_v32 = vmul.f32 %v1927_v52, %v1923_v51  ;;  %v679_v33 = vmul.f32 %v1944_v2, %v1953_v8  ;;  %v690_v20 = vmax.f32 %v1916_v47, %v665_v4 }
  0x86   : > { %v873_v43 = vadd.f32 %v872_v36, %v871_v37  ;;  %v812_v44 = vrot.slane %v1311_v38, %v1935_v57  ;;  %v819_v45 = vrot.slane %v1312_v39, %v1935_v57  ;;  %v675_v62 = vsub.f32 %v673_v1, %v674_v23 }
  0x87   : > { %v1416_v59 = vpop.eup %1415  ;;  %v672_v34 = vmax.f32 %v671_v27, 0.0  ;;  %v691_v21 = vmin.f32 %v1912_v41, %v664_v3  ;;  %v693_v1 = vmax.f32 %v1918_v48, %v668_v13  ;;  %v694_v23 = vmin.f32 %v1914_v46, %v667_v6 }
  0x88   : > { %v875_v49 = vadd.f32 %v874_v42, %v873_v43  ;;  %v820_v50 = vcombine.low %v812_v44, %v819_v45  ;;  %v709_v63 = vmul.f32 %v1416_v59, %v706_v54  ;;  %v676_v35 = vmax.f32 %v675_v62, 0.0 }
  0x89   : > { %v1418_v19 = vpop.eup %1417  ;;  %v680_v42 = vadd.f32 %v679_v33, %v678_v32 }
  0x8a   : > { %876 = vadd.xlane.f32.xlu0 %v875_v49  ;;  %v827_v55 = vrot.slane %v820_v50, %v1935_v57  ;;  %v710_v15 = vmul.f32 %v709_v63, %v709_v63  ;;  %v736_v57 = vmin.f32 %v1982_v22, %v1969_v7  ;;  %v677_v40 = vmul.f32 %v676_v35, %v672_v34 }
  0x8c   : > { %v845_v60 = vsel %vm843_vm14, %v827_v55, %v844_v53  ;;  %v711_v16 = vmul.f32 0.0028662258, %v710_v15  ;;  %v739_v61 = vmul.f32 %v1418_v19, %v736_v57  ;;  %v681_v50 = vsub.f32 %v680_v42, %v677_v40 }
  0x8d   : > { %846 = vst [vmem:[%s600_s29] sm:$0xf] %v845_v60  ;;  %v725_v60 = vmul.f32 %v710_v15, %v709_v63 }
  0x8e   : > { %v712_v24 = vadd.f32 -0.016165737, %v711_v16  ;;  %v740_v26 = vmul.f32 %v739_v61, %v739_v61  ;;  %v682_v56 = vmax.f32 %v681_v50, 1e-06 }
  0x90   : > { %v713_v25 = vmul.f32 %v712_v24, %v710_v15  ;;  %v741_v29 = vmul.f32 0.0028662258, %v740_v26  ;;  %1419 = vrcp.f32 %v682_v56 }
  0x92   : > { %v714_v28 = vadd.f32 0.042909615, %v713_v25  ;;  %v742_v31 = vadd.f32 -0.016165737, %v741_v29  ;;  %v695_v29 = vsub.f32 %v693_v1, %v694_v23 }
  0x94   : > { %v715_v30 = vmul.f32 %v714_v28, %v710_v15  ;;  %v743_v37 = vmul.f32 %v742_v31, %v740_v26  ;;  %v755_v28 = vmul.f32 %v740_v26, %v739_v61  ;;  %v697_v41 = vmul.f32 %v695_v29, %v695_v29 }
  0x96   : > { %v716_v36 = vadd.f32 -0.07528964, %v715_v30  ;;  %v744_v39 = vadd.f32 0.042909615, %v743_v37 }
  0x98   : > { %v717_v38 = vmul.f32 %v716_v36, %v710_v15  ;;  %v745_v44 = vmul.f32 %v744_v39, %v740_v26 }
  0x9a   : > { %v718_v43 = vadd.f32 0.10656264, %v717_v38  ;;  %v746_v49 = vadd.f32 -0.07528964, %v745_v44 }
  0x9c   : > { %v719_v45 = vmul.f32 %v718_v43, %v710_v15  ;;  %v747_v54 = vmul.f32 %v746_v49, %v740_v26 }
  0x9e   : > { %v720_v53 = vadd.f32 -0.142089, %v719_v45  ;;  %v748_v52 = vadd.f32 0.10656264, %v747_v54 }
  0xa0   : > { %v721_v55 = vmul.f32 %v720_v53, %v710_v15  ;;  %v749_v2 = vmul.f32 %v748_v52, %v740_v26 }
  0xa2   : > { %v722_v58 = vadd.f32 0.19993551, %v721_v55  ;;  %v750_v57 = vadd.f32 -0.142089, %v749_v2 }
  0xa4   : > { %v723_v59 = vmul.f32 %v722_v58, %v710_v15  ;;  %v751_v19 = vmul.f32 %v750_v57, %v740_v26  ;;  %v692_v15 = vsub.f32 %v690_v20, %v691_v21 }
  0xa6   : > { %v724_v16 = vadd.f32 -0.33333147, %v723_v59  ;;  %v752_v25 = vadd.f32 0.19993551, %v751_v19  ;;  %v696_v4 = vmul.f32 %v692_v15, %v692_v15 }
  0xa8   : > { %v726_v24 = vmul.f32 %v725_v60, %v724_v16  ;;  %v753_v62 = vmul.f32 %v752_v25, %v740_v26  ;;  %v698_v6 = vadd.f32 %v697_v41, %v696_v4 }
  0xaa   : > { %v727_v27 = vadd.f32 %v726_v24, %v709_v63  ;;  %v754_v31 = vadd.f32 -0.33333147, %v753_v62  ;;  %v1420_v63 = vpop.eup %1419  ;;  %v699_v34 = vmax.f32 %v698_v6, 1e-06 }
  0xab   : > { %v684_v26 = vmul.f32 %v1420_v63, %v677_v40 }
  0xac   : > { %v728_v30 = vsub.f32 1.5707964, %v727_v27  ;;  %v756_v47 = vmul.f32 %v755_v28, %v754_v31  ;;  %1421 = vrcp.f32 %v699_v34 }
  0xae   : > { %v729_v32 = vsel %vm705_vm15, %v728_v30, %v727_v27  ;;  %v757_v3 = vadd.f32 %v756_v47, %v739_v61  ;;  %v766_v61 = vsub.f32 1.0, %v684_v26 }
  0xaf   : > { %v731_v48 = vsub.f32 0.0, %v729_v32 }
  0xb0   : > { %v758_v46 = vsub.f32 1.5707964, %v757_v3 }
  0xb1   : > { %v732_v5 = vsel %vm730_vm2, %v731_v48, %v729_v32 }
  0xb2   : > { %v759_v13 = vsel %vm735_vm1, %v758_v46, %v757_v3  ;;  %v995_v46 = vand.u32 127, %v640_v0 }
  0xb3   : > { %v761_v12 = vsub.f32 0.0, %v759_v13 }
  0xb4   : > { %vm999_vm4 = vcmp.eq.s32.totalorder %v995_v46, 1  ;;  %vm1003_vm5 = vcmp.eq.s32.totalorder %v995_v46, 2  ;;  %vm1007_vm6 = vcmp.eq.s32.totalorder %v995_v46, 3 }
  0xb5   : > { %v762_v33 = vsel %vm760_vm3, %v761_v12, %v759_v13 }
  0xb6   : > { %v763_v35 = vsub.f32 %v732_v5, %v762_v33 }
  0xb8   : > { %v764_v36 = vmul.f32 %v763_v35, %v763_v35 }
  0xb9   : > { %v1422_v51 = vpop.eup %1421 }
  0xba   : > { %v765_v37 = vmul.f32 0.40528473, %v764_v36  ;;  %v701_v22 = vmul.f32 %v1422_v51, %v1977_v11 }
  0xbc   : > { %v767_v38 = vadd.f32 %v766_v61, %v765_v37  ;;  %v702_v42 = vsub.f32 %v684_v26, %v701_v22 }
  0xbe   : > { %v768_v7 = vmax.f32 %v767_v38, 1e-06 }
  0xc0   : > { %1423 = vrcp.f32 %v768_v7 }
  0xcd   : > { %v1424_v39 = vpop.eup %1423 }
  0xce   : > { %v770_v43 = vmul.f32 %v1424_v39, %v765_v37 }
  0xd0   : > { %v771_v8 = vmul.f32 %v770_v43, %v765_v37 }
  0xd2   : > { %v772_v44 = vsub.f32 %v702_v42, %v771_v8 }
  0xd4   : > { %v773_v45 = vsub.f32 1.0, %v772_v44 }
  0xd6   : > { %v774_v40 = vmul.f32 %v773_v45, %v1960_v14 }
  0xd8   : > { %v889_v49 = vrot.slane %v774_v40, %v1878_v9  ;;  %v893_v50 = vrot.slane %v774_v40, %v1963_v17  ;;  %v897_v53 = vrot.slane %v774_v40, %v1881_v10  ;;  %v901_v54 = vrot.slane %v774_v40, %v1966_v18 }
  0xda   : > { %v906_v55 = vsel %vm829_vm0, %v889_v49, 0.0  ;;  %v907_v11 = vsel %vm829_vm0, %v893_v50, 0.0  ;;  %v909_v52 = vsel %vm829_vm0, %v897_v53, 0.0  ;;  %v911_v58 = vsel %vm829_vm0, %v901_v54, 0.0 }
  0xdb   : > { %v908_v56 = vadd.f32 %v907_v11, %v906_v55  ;;  %vm996_vm0 = vcmp.eq.s32.totalorder %v995_v46, 0 }
  0xdd   : > { %v910_v2 = vadd.f32 %v909_v52, %v908_v56 }
  0xdf   : > { %v912_v59 = vadd.f32 %v911_v58, %v910_v2 }
  0xe1   : > { %913 = vadd.xlane.f32.xlu0 %v912_v59 }
 0x101   : > { %v950_v18 = vpop.xlane.xlu1 %949 }
 0x102   : > { %v951_v20 = vrot.slane %v950_v18, 4 }
 0x104   : > { %v952_v1 = vadd.f32 %v951_v20, %v950_v18 }
 0x105   : > { %v986_v19 = vpop.xlane.xlu1 %985 }
 0x106   : > { %v987_v21 = vrot.slane %v986_v19, 4  ;;  %v953_v24 = vrot.slane %v952_v1, 2 }
 0x108   : > { %v988_v23 = vadd.f32 %v987_v21, %v986_v19  ;;  %v954_v15 = vadd.f32 %v953_v24, %v952_v1 }
 0x10a   : > { %v989_v27 = vrot.slane %v988_v23, 2  ;;  %v955_v32 = vrot.slane %v954_v15, 1 }
 0x10c   : > { %v990_v29 = vadd.f32 %v989_v27, %v988_v23  ;;  %v956_v3 = vadd.f32 %v955_v32, %v954_v15 }
 0x10e   : > { %v991_v4 = vrot.slane %v990_v29, 1 }
 0x110   : > { %v992_v48 = vadd.f32 %v991_v4, %v990_v29 }
 0x113   : > { %v877_v14 = vpop.xlane.xlu0 %876 }
 0x114   : > { %v878_v9 = vrot.slane %v877_v14, 4 }
 0x116   : > { %v879_v60 = vadd.f32 %v878_v9, %v877_v14 }
 0x118   : > { %v880_v17 = vrot.slane %v879_v60, 2 }
 0x11a   : > { %v881_v57 = vadd.f32 %v880_v17, %v879_v60 }
 0x11c   : > { %v882_v10 = vrot.slane %v881_v57, 1 }
 0x11e   : > { %v883_v16 = vadd.f32 %v882_v10, %v881_v57 }
 0x120   : > { %1319 = vpush %v883_v16 }
 0x151   : > { %s1320_s25 = spop %1319 }
 0x152   : > { %v997_v63 = vstv %s1320_s25 }
 0x153   : > { %v998_v13 = vsel %vm996_vm0, %v997_v63, 0.0 }
 0x16a   : > { %v914_v25 = vpop.xlane.xlu0 %913 }
 0x16b   : > { %v915_v62 = vrot.slane %v914_v25, 4 }
 0x16d   : > { %v916_v28 = vadd.f32 %v915_v62, %v914_v25 }
 0x16f   : > { %v917_v30 = vrot.slane %v916_v28, 2 }
 0x171   : > { %v918_v31 = vadd.f32 %v917_v30, %v916_v28 }
 0x173   : > { %v919_v47 = vrot.slane %v918_v31, 1 }
 0x175   : > { %v920_v41 = vadd.f32 %v919_v47, %v918_v31 }
 0x177   : > { %1321 = vpush %v920_v41 }
 0x178   : > { %1323 = vpush %v956_v3 }
 0x179   : > { %1325 = vpush %v992_v48 }
 0x1a8   : > { %s1322_s26 = spop %1321 }
 0x1a9   : > { %v1000_v6 = vstv %s1322_s26  ;;  %s1324_s11 = spop %1323 }
 0x1aa   : > { %v1001_v5 = vsel %vm999_vm4, %v1000_v6, 0.0  ;;  %v1004_v12 = vstv %s1324_s11  ;;  %s1326_s28 = spop %1325 }
 0x1ab   : > { %v1002_v26 = vadd.f32 %v1001_v5, %v998_v13  ;;  %v1008_v33 = vstv %s1326_s28  ;;  %v1005_v0 = vsel %vm1003_vm5, %v1004_v12, 0.0 }
 0x1ac   : > { %v1009_v35 = vsel %vm1007_vm6, %v1008_v33, 0.0 }
 0x1ad   : > { %v1006_v34 = vadd.f32 %v1005_v0, %v1002_v26 }
 0x1af   : > { %v1010_v36 = vadd.f32 %v1009_v35, %v1006_v34 }
 0x1b1   : > { %1011 = vst [vmem:[%s564_s21] sm:$0x1] %v1010_v36 }
 0x1b2   : > { %1548 = shalt.err (!%p1545_p0)
}
 0x1b3   : > { %s1549_s18 = scalar_lea.hbm %s1035_s23, 16  ;;  %s1553_s30 = scalar_lea.hbm %s2117_s9, 32 }
 0x1b4   : > { %p1550_p4 = scmp.ne.s32.totalorder %s1035_s23, %s1549_s18  ;;  %p1554_p7 = scmp.lt.s32.totalorder %s1035_s23, %s2117_s9 }
 0x1b5   : > { %p1555_p2 = scmp.lt.s32.totalorder %s1553_s30, %s1549_s18 }
 0x1b6   : > { %p1551_p6 = pnand %p1550_p4, %p2159_p9 }
 0x1b7   : > { %p1556_p5 = por %p1555_p2, %p1554_p7 }
 0x1b8   : > { %p1552_p8 = pneg %p1551_p6 }
 0x1ba   : > { %p1557_p11 = pnand %p1556_p5, %p1552_p8 }
 0x1bc   : > { %1560 = shalt.err (!%p1557_p11)
}
 0x1bd   : > { %1337 = dma.vmem_to_hbm [thread:$0]  (%p2159_p9), %s1038_s20, 16, %s1035_s23, %s1021_s0  }
 0x1be PF: > { %s2160_s25 = sld [smem:[#allocation15_spill]] }
 0x1bf   : > { %s2161_s26 = sld [smem:[#allocation20_spill]] }
 0x1c0   : > { %s2162_s11 = sld [smem:[#allocation17_spill]] }
 0x1c4   : > { %s1060_s28 = sand.u32 1, %s2160_s25  }
 0x1c5   : > { %p2163_p3 = scmp.ne.s32.totalorder %s2161_s26, 0  ;;  %s1061_s22 = scalar_lea.sflag [#allocation4], %s1060_s28 }
 0x1c6   : > { %p2164_p12 = scmp.ge.s32.totalorder %s2162_s11, 2 }
 0x1c8   : > { %p1354_p13 = pnand %p2164_p12, %p2163_p3 }
 0x1ca   : > { %p1355_p1 = pneg %p1354_p13 }
 0x1cc   : > { %1598 = dma.done.wait (%p1355_p1), %s1061_s22, 16  }
 0x1cd   : > { %1600 = vsyncadd (%p1355_p1), %s1061_s22, 4294967280  ;;  %s30_s14 = sadd.s32 1, %s2162_s11   ;;  %s2165_s21 = sld [smem:[#allocation16_spill]] }
 0x1ce   : > { %p27_p10 = scmp.ge.s32.totalorder %s30_s14, 4   ;;  %s2166_s11 = sld [smem:[#allocation19_spill]] }
 0x1cf   : > { %s2167_s24 = sld [smem:[#allocation18_spill]]  ;;  %s2168_s30 = smov %s1607_s10 }
 0x1d0   : > { %s2170_s12 = smov %s1619_s13 }
 0x1d1   :  { %29 = sbr.rel (!%p27_p10) target bundleno = 13 (0xd), region = 156 }
 0x1d3   : > { %s2169_s10 = smov %s2165_s21 }
 0x1d5   : > { %s2171_s13 = smov %s2167_s24 }
 0x1d6   :  { %1065 = vsyncpa [#allocation3], 1 }
 0x1d7   :  { %1067 = vsyncpa [#allocation3 + $0x1], 1 }
 0x1d8   :  { %1068 = vsyncpa [#allocation6], 1 }
 0x1d9   :  { %1070 = vsyncpa [#allocation6 + $0x1], 1 }
 0x1da   :  { %1071 = vsyncpa [#allocation9], 1 }
 0x1db   :  { %1072 = vsyncpa [#allocation4], 1 }
 0x1dc   :  { %1074 = vsyncpa [#allocation4 + $0x1], 1 }

</bundles_post_ra>
